<compile_context>
chip_gen: v5e
topology: v5e:2x2
jax: 0.10.0
libtpu: 0.0.40
codegen_flags: <defaults>
</compile_context>

<pallas_src>
import functools

import numpy as np
import jax
import jax.numpy as jnp
from jax.experimental import pallas as pl
from jax.experimental.pallas import tpu as pltpu

LOG_2PI = float(np.log(2.0 * np.pi))


def _gaussian_policy_sample_kernel(c_ref, s_ref, w_ref, b_ref, logstd_ref,
                                   eps_ref, act_ref, lp_ref, *, inv_a):
    """Fused forward + rsample + log_prob.mean(axis=1) for one batch tile."""
    # forward(): mean = states @ W + b   (bf16 operands, f32 MXU accumulate)
    mean = jnp.dot(s_ref[...], w_ref[...],
                   preferred_element_type=jnp.float32) + b_ref[...]

    # dist.rsample(): actions = mean + exp(log_std) * eps
    eps = eps_ref[...]
    act_ref[...] = mean + jnp.exp(logstd_ref[...]) * eps

    # dist.log_prob(actions).mean(axis=1):
    #   (actions - mean)/std == eps exactly, so
    #   mean_j log_prob = -0.5*mean_j(eps^2) - mean_j(log_std) - 0.5*log(2*pi)
    # c_ref[0] = -(mean(log_std_true) + 0.5*log(2*pi)) is precomputed (SMEM).
    # Padded eps lanes are zero, so summing over A_pad equals summing over A;
    # inv_a = 1/A_true keeps the mean exact.
    lp_ref[...] = (-0.5 * inv_a) * jnp.sum(eps * eps, axis=1,
                                           keepdims=True) + c_ref[0]


@functools.partial(jax.jit, static_argnames=("tile_b",))
def base_policy_sample(states, w, b, log_std, eps, *, tile_b=512):
    """Pallas wrapper replicating BasePolicy.sample() for a Gaussian policy.

    Returns (actions [B, A] f32, log_probs_mean [B] f32)."""
    B, D = states.shape
    A = w.shape[1]

    # Lane-dense action axis (multiple of 128) and sublane-aligned batch.
    A_pad = ((A + 127) // 128) * 128
    B8 = ((B + 7) // 8) * 8
    tb = min(tile_b, B8)                      # batch tile (multiple of 8)
    B_pad = ((B8 + tb - 1) // tb) * tb
    grid = (B_pad // tb,)

    # Matmul operands in bf16 (MXU-native); everything else stays f32.
    s_p = jnp.pad(states, ((0, B_pad - B), (0, 0))).astype(jnp.bfloat16)
    w_p = jnp.pad(w, ((0, 0), (0, A_pad - A))).astype(jnp.bfloat16)
    b_p = jnp.pad(jnp.reshape(b, (1, A)).astype(jnp.float32),
                  ((0, 0), (0, A_pad - A)))
    ls_p = jnp.pad(jnp.reshape(log_std, (1, A)).astype(jnp.float32),
                   ((0, 0), (0, A_pad - A)))
    eps_p = jnp.pad(eps.astype(jnp.float32),
                    ((0, B_pad - B), (0, A_pad - A)))

    # Constant part of the row-mean log-prob, folded once into a scalar.
    c = jnp.reshape(-(jnp.mean(log_std.astype(jnp.float32)) + 0.5 * LOG_2PI),
                    (1,))

    kernel = functools.partial(_gaussian_policy_sample_kernel, inv_a=1.0 / A)

    actions, lp = pl.pallas_call(
        kernel,
        out_shape=(
            jax.ShapeDtypeStruct((B_pad, A_pad), jnp.float32),
            jax.ShapeDtypeStruct((B_pad, 1), jnp.float32),
        ),
        grid_spec=pltpu.PrefetchScalarGridSpec(
            num_scalar_prefetch=0,
            grid=grid,
            in_specs=[
                pl.BlockSpec(memory_space=pltpu.MemorySpace.SMEM),   # c scalar
                pl.BlockSpec((tb, D), lambda i: (i, 0)),             # states
                pl.BlockSpec((D, A_pad), lambda i: (0, 0)),          # W
                pl.BlockSpec((1, A_pad), lambda i: (0, 0)),          # b
                pl.BlockSpec((1, A_pad), lambda i: (0, 0)),          # log_std
                pl.BlockSpec((tb, A_pad), lambda i: (i, 0)),         # eps
            ],
            out_specs=(
                pl.BlockSpec((tb, A_pad), lambda i: (i, 0)),         # actions
                pl.BlockSpec((tb, 1), lambda i: (i, 0)),             # logp mean
            ),
        ),
        compiler_params=pltpu.CompilerParams(
            dimension_semantics=("parallel",)),
    )(c, s_p, w_p, b_p, ls_p, eps_p)

    return actions[:B, :A], lp[:B, 0]


def reference_sample(states, w, b, log_std, eps):
    """Pure-JAX reference mirroring torch Normal rsample/log_prob semantics.

    Keeps the original (non-simplified) math so it also validates the
    in-kernel algebraic simplification ((actions - mean)/std == eps)."""
    mean = jnp.dot(states.astype(jnp.bfloat16), w.astype(jnp.bfloat16),
                   preferred_element_type=jnp.float32) + b[None, :]
    std = jnp.exp(log_std)[None, :]
    actions = mean + std * eps
    z = (actions - mean) / std
    log_prob = -0.5 * z * z - log_std[None, :] - 0.5 * LOG_2PI
    return actions, jnp.mean(log_prob, axis=1)


if __name__ == "__main__":
    # Small shapes implied by the forward: batch of flat state vectors ->
    # per-action Normal distribution.
    B, D, A = 8, 32, 16

    key = jax.random.PRNGKey(0)
    k_s, k_w, k_b, k_ls, k_eps = jax.random.split(key, 5)

    states = jax.random.normal(k_s, (B, D), dtype=jnp.float32)
    # Deterministic synthetic parameters (linear mean head + learned log_std).
    w = jax.random.normal(k_w, (D, A), dtype=jnp.float32) * (1.0 / np.sqrt(D))
    b = jax.random.normal(k_b, (A,), dtype=jnp.float32) * 0.1
    log_std = jax.random.normal(k_ls, (A,), dtype=jnp.float32) * 0.1 - 0.5
    # Reparameterization noise for rsample().
    eps = jax.random.normal(k_eps, (B, A), dtype=jnp.float32)

    actions, logp_mean = base_policy_sample(states, w, b, log_std, eps)
    jax.block_until_ready((actions, logp_mean))

    ref_actions, ref_logp = reference_sample(states, w, b, log_std, eps)
    np.testing.assert_allclose(np.asarray(actions), np.asarray(ref_actions),
                               rtol=1e-4, atol=1e-4)
    np.testing.assert_allclose(np.asarray(logp_mean), np.asarray(ref_logp),
                               rtol=1e-4, atol=1e-4)

    print("KERNEL_OK")
</pallas_src>

<mosaic_0001>
module attributes {stable_mosaic.version = 11 : i64} {
  func.func @_gaussian_policy_sample_kernel(%arg0: i32, %arg1: memref<1xf32, #tpu.memory_space<smem>>, %arg2: memref<8x32xbf16, #tpu.memory_space<vmem>>, %arg3: memref<32x128xbf16, #tpu.memory_space<vmem>>, %arg4: memref<1x128xf32, #tpu.memory_space<vmem>>, %arg5: memref<1x128xf32, #tpu.memory_space<vmem>>, %arg6: memref<8x128xf32, #tpu.memory_space<vmem>>, %arg7: memref<8x128xf32, #tpu.memory_space<vmem>>, %arg8: memref<8x1xf32, #tpu.memory_space<vmem>>) attributes {dimension_semantics = [#tpu.dimension_semantics<parallel>], iteration_bounds = array<i64: 1>, scalar_prefetch = 0 : i64, scratch_operands = 0 : i64, tpu.core_type = #tpu.core_type<tc>, window_params = [{transform_indices = @transform_0, window_bounds = array<i64: 1>}, {transform_indices = @transform_1, window_bounds = array<i64: 8, 32>}, {pipeline_mode = #tpu.pipeline_mode<synchronous>, transform_indices = @transform_2, window_bounds = array<i64: 32, 128>}, {pipeline_mode = #tpu.pipeline_mode<synchronous>, transform_indices = @transform_3, window_bounds = array<i64: 1, 128>}, {pipeline_mode = #tpu.pipeline_mode<synchronous>, transform_indices = @transform_4, window_bounds = array<i64: 1, 128>}, {transform_indices = @transform_5, window_bounds = array<i64: 8, 128>}, {transform_indices = @transform_6, window_bounds = array<i64: 8, 128>}, {transform_indices = @transform_7, window_bounds = array<i64: 8, 1>}]} {
    %c0 = arith.constant 0 : index
    %c0_0 = arith.constant 0 : index
    %0 = vector.load %arg2[%c0, %c0_0] : memref<8x32xbf16, #tpu.memory_space<vmem>>, vector<8x32xbf16>
    %c0_1 = arith.constant 0 : index
    %c0_2 = arith.constant 0 : index
    %1 = vector.load %arg3[%c0_1, %c0_2] : memref<32x128xbf16, #tpu.memory_space<vmem>>, vector<32x128xbf16>
    %cst = arith.constant dense<0.000000e+00> : vector<8x128xf32>
    %2 = tpu.matmul %0, %1, %cst {dimension_numbers = #tpu.dot_dimension_numbers<[1], [0], [0], [1], [0, 0, 1, 1], [], []>} : vector<8x32xbf16>, vector<32x128xbf16>, vector<8x128xf32> -> vector<8x128xf32>
    %c0_3 = arith.constant 0 : index
    %c0_4 = arith.constant 0 : index
    %3 = vector.load %arg4[%c0_3, %c0_4] : memref<1x128xf32, #tpu.memory_space<vmem>>, vector<1x128xf32>
    %4 = vector.broadcast %3 : vector<1x128xf32> to vector<8x128xf32>
    %5 = arith.addf %2, %4 : vector<8x128xf32>
    %c0_5 = arith.constant 0 : index
    %c0_6 = arith.constant 0 : index
    %6 = vector.load %arg6[%c0_5, %c0_6] : memref<8x128xf32, #tpu.memory_space<vmem>>, vector<8x128xf32>
    %c0_7 = arith.constant 0 : index
    %c0_8 = arith.constant 0 : index
    %7 = vector.load %arg5[%c0_7, %c0_8] : memref<1x128xf32, #tpu.memory_space<vmem>>, vector<1x128xf32>
    %8 = math.exp %7 : vector<1x128xf32>
    %9 = vector.broadcast %8 : vector<1x128xf32> to vector<8x128xf32>
    %10 = arith.mulf %9, %6 : vector<8x128xf32>
    %11 = arith.addf %5, %10 : vector<8x128xf32>
    %c0_9 = arith.constant 0 : index
    %c0_10 = arith.constant 0 : index
    %12 = vector.load %arg7[%c0_9, %c0_10] : memref<8x128xf32, #tpu.memory_space<vmem>>, vector<8x128xf32>
    tpu.vector_store %arg7[%c0_9, %c0_10], %11 {strides = array<i32>} : memref<8x128xf32, #tpu.memory_space<vmem>>, vector<8x128xf32>,
    %13 = arith.mulf %6, %6 : vector<8x128xf32>
    %cst_11 = arith.constant dense<0.000000e+00> : vector<8xf32>
    %14 = vector.multi_reduction <add>, %13, %cst_11 [1] : vector<8x128xf32> to vector<8xf32>
    %15 = vector.shape_cast %14 : vector<8xf32> to vector<8x1xf32>
    %cst_12 = arith.constant -3.125000e-02 : f32
    %16 = vector.broadcast %cst_12 : f32 to vector<8x1xf32>
    %17 = arith.mulf %16, %15 : vector<8x1xf32>
    %c0_13 = arith.constant 0 : index
    %18 = memref.load %arg1[%c0_13] : memref<1xf32, #tpu.memory_space<smem>>
    %19 = vector.broadcast %18 : f32 to vector<8x1xf32>
    %20 = arith.addf %17, %19 : vector<8x1xf32>
    %c0_14 = arith.constant 0 : index
    %c0_15 = arith.constant 0 : index
    %21 = vector.load %arg8[%c0_14, %c0_15] : memref<8x1xf32, #tpu.memory_space<vmem>>, vector<8x1xf32>
    tpu.vector_store %arg8[%c0_14, %c0_15], %20 {strides = array<i32>} : memref<8x1xf32, #tpu.memory_space<vmem>>, vector<8x1xf32>,
    return
  }
  func.func @transform_0(%arg0: i32) -> i32 {
    %c0_i32 = arith.constant 0 : i32
    %c0_i32_0 = arith.constant 0 : i32
    return %c0_i32 : i32
  }
  func.func @transform_1(%arg0: i32) -> (i32, i32) {
    %c0_i32 = arith.constant 0 : i32
    %c0_i32_0 = arith.constant 0 : i32
    return %arg0, %c0_i32 : i32, i32
  }
  func.func @transform_2(%arg0: i32) -> (i32, i32) {
    %c0_i32 = arith.constant 0 : i32
    %c0_i32_0 = arith.constant 0 : i32
    %c0_i32_1 = arith.constant 0 : i32
    return %c0_i32, %c0_i32_0 : i32, i32
  }
  func.func @transform_3(%arg0: i32) -> (i32, i32) {
    %c0_i32 = arith.constant 0 : i32
    %c0_i32_0 = arith.constant 0 : i32
    %c0_i32_1 = arith.constant 0 : i32
    return %c0_i32, %c0_i32_0 : i32, i32
  }
  func.func @transform_4(%arg0: i32) -> (i32, i32) {
    %c0_i32 = arith.constant 0 : i32
    %c0_i32_0 = arith.constant 0 : i32
    %c0_i32_1 = arith.constant 0 : i32
    return %c0_i32, %c0_i32_0 : i32, i32
  }
  func.func @transform_5(%arg0: i32) -> (i32, i32) {
    %c0_i32 = arith.constant 0 : i32
    %c0_i32_0 = arith.constant 0 : i32
    return %arg0, %c0_i32 : i32, i32
  }
  func.func @transform_6(%arg0: i32) -> (i32, i32) {
    %c0_i32 = arith.constant 0 : i32
    %c0_i32_0 = arith.constant 0 : i32
    return %arg0, %c0_i32 : i32, i32
  }
  func.func @transform_7(%arg0: i32) -> (i32, i32) {
    %c0_i32 = arith.constant 0 : i32
    %c0_i32_0 = arith.constant 0 : i32
    return %arg0, %c0_i32 : i32, i32
  }
}

</mosaic_0001>

<bundles_post_ra>
// kernel: base_policy_sample.1
= control target key start
LH: loop header
LB: loop body
LE: loop exit
PB: predicated region body
PF: predicated region fallthrough
CT: control target
= control target key end

     0   :  { %s214_s0 = inlined_call_operand.<no memory space> [shape: f32[1], index: 0, kind: input, shape index: {}]   ;;  %s215_s1 = inlined_call_operand.vmem [shape: bf16[8,32], index: 1, kind: input, shape index: {}]   ;;  %s216_s2 = inlined_call_operand.vmem [shape: bf16[32,128], index: 2, kind: input, shape index: {}]   ;;  %s217_s3 = inlined_call_operand.vmem [shape: f32[1,128], index: 3, kind: input, shape index: {}]   ;;  %s218_s4 = inlined_call_operand.vmem [shape: f32[1,128], index: 4, kind: input, shape index: {}]   ;;  %s219_s5 = inlined_call_operand.vmem [shape: f32[8,128], index: 5, kind: input, shape index: {}]   ;;  %s220_s6 = inlined_call_operand.hbm [shape: f32[8,128], index: 6, kind: output, shape index: {0}]   ;;  %s221_s7 = inlined_call_operand.vmem [shape: f32[8,1], index: 7, kind: output, shape index: {1}]  }
   0x1   :  { %v115_v0 = vld [vmem:[%s216_s2 + $0x8] sm:$0xff]  ;;  %v66_v1 = vld [vmem:[%s219_s5] sm:$0xff] }
   0x2   :  { %59 = vmatpush.bf16.msra.mxu0 %v115_v0  ;;  %v114_v2 = vld [vmem:[%s216_s2] sm:$0xff]  ;;  %v76_v3 = vmul.f32 %v66_v1, %v66_v1 }
   0x3   :  { %14 = vsyncpa [#allocation4], 0  ;;  %v28_v4 = vld [vmem:[%s215_s1] sm:$0xf]  ;;  %vm49_vm0 = vcmask 261120   ;;  %v81_v8 = vstv %s214_s0  ;;  %vm83_vm1 = vcmask 7168  }
   0x4   :  { %77 = vadd.xlane.f32.xlu0 %v76_v3  ;;  %v67_v5 = vld [vmem:[%s218_s4] sm:$0x1]  ;;  %s146_s4 = smov [#allocation3]   ;;  %s92_s16 = sshll.u32 %s220_s6, 4  ;;  %s93_s16 = int_to_ptr.hbm [resolvable:$true] %s92_s16 }
   0x5   :  { %v68_v6 = vmul.f32 1.442695, %v67_v5  ;;  %v117_v13 = vld [vmem:[%s217_s3] ss:$0 sm:$0xff]  ;;  %s90_s14 = sshll.u32 %s146_s4, 4  ;;  %s91_s14 = int_to_ptr.vmem [resolvable:$true] %s90_s14 }
   0x6   :  { %60 = vmatpush.bf16.msra.mxu0 %v114_v2 }
   0x7   :  { %118 = vpow2.f32 %v68_v6 }
   0x9   :  { %113 = vmatmul.msk.bf16.vlgmr.msra.gmra.mxu0 %vm49_vm0, %v28_v4 }
   0xd   :  { %v119_v11 = vpop.eup %118 }
   0xe   :  { %v71_v12 = vperm.slane %v119_v11, 0 }
  0x10   :  { %v73_v14 = vmul.f32 %v71_v12, %v66_v1 }
  0x77   :  { %v78_v7 = vpop.xlane.xlu0 %77 }
  0x78   :  { %v79_v9 = vmul.f32 -0.03125, %v78_v7 }
  0x7a   :  { %v82_v10 = vadd.f32 %v81_v8, %v79_v9 }
  0x7c   :  { %84 = vst.msk [vmem:[%s221_s7] sm:$0xff] %vm83_vm1, %v82_v10 }
  0x86   :  { %v62_v15 = vpop.f32.mrf.mxu0 }
  0x87   :  { %v63_v16 = vadd.f32 %v117_v13, %v62_v15 }
  0x89   :  { %v74_v17 = vadd.f32 %v73_v14, %v63_v16 }
  0x8b   :  { %75 = vst [vmem:[#allocation3] sm:$0xff] %v74_v17 }
  0x8c   :  { %95 = dma.vmem_to_hbm [thread:$0]  %s91_s14, 128, %s93_s16, [#allocation4]  }
  0x8e   :  { %v64_v18 = vpop.f32.mrf.mxu0 }
  0x8f   :  { %144 = dma.done.wait [#allocation4], 128  }
  0x90   :  { %145 = vsyncadd [#allocation4], 4294967168 }
  0x91   :  { %104 = vsyncpa [#allocation4], 1 }

</bundles_post_ra>
